<compile_context>
chip_gen: v6e
topology: v6e:2x2x1
jax: 0.10.0
libtpu: 0.0.40
codegen_flags: <defaults>
</compile_context>

<pallas_src>
import jax
import jax.numpy as jnp
from jax.experimental import pallas as pl
from jax.experimental.pallas import tpu as pltpu

_LANE = 128
_SUBLANE = 8
_TARGET_BLOCK_ELEMS = 512 * 1024   # ~2 MiB f32 per x/o block (well under VMEM,
                                   # double-buffered in+out ~= 8 MiB on all chips)
_MAX_TS = 16 * 1024                # cap on spatial tile width (multiple of 128)


def _round_up(x, m):
    return ((x + m - 1) // m) * m


def _dyt_kernel(alpha_ref, gamma_ref, beta_ref, x_ref, o_ref):
    # alpha/gamma/beta: (TR, 1) f32 blocks; x/o: (TR, TS) activation-dtype blocks.
    a = alpha_ref[...]
    g = gamma_ref[...]
    b = beta_ref[...]
    x = x_ref[...].astype(jnp.float32)      # compute in f32 (exact on v5e too)
    y = g * jnp.tanh(a * x) + b             # (TR,1) lane-splats over (TR,TS)
    o_ref[...] = y.astype(o_ref.dtype)


def dyt_norm(x_nchw, alpha, gamma, beta):
    """DyTNorm forward. x_nchw: (N,C,H,W); alpha/gamma/beta: (C,)."""
    N, C, H, W = x_nchw.shape
    HW = H * W
    R = N * C

    # --- spatial tile: lane-dense (multiple of 128), capped for VMEM ---
    HW128 = _round_up(HW, _LANE)
    TS = HW128 if HW128 <= _MAX_TS else _MAX_TS
    HW_pad = _round_up(HW, TS)              # multiple of TS (and of 128)

    # --- row tile: multiple of 8, sized so one block is ~2 MiB of f32 ---
    TR = max(_SUBLANE, (_TARGET_BLOCK_ELEMS // TS) // _SUBLANE * _SUBLANE)
    TR = min(TR, _round_up(R, _SUBLANE))
    R_pad = _round_up(R, TR)

    # Flatten NCHW -> (N*C, HW); row r = n*C + c carries channel c.
    x2 = x_nchw.reshape(R, HW)
    if (R_pad, HW_pad) != (R, HW):
        # Zero-pad so blocks divide evenly; padded region is sliced off below.
        x2 = jnp.pad(x2, ((0, R_pad - R), (0, HW_pad - HW)))

    def _per_row(p):
        # One f32 param value per flattened row (kept f32: matches PyTorch,
        # which holds f32 parameters even for lower-precision activations).
        pr = jnp.tile(p.astype(jnp.float32), N).reshape(R, 1)
        if R_pad != R:
            pr = jnp.pad(pr, ((0, R_pad - R), (0, 0)))
        return pr

    a_rows = _per_row(alpha)
    g_rows = _per_row(gamma)
    b_rows = _per_row(beta)

    param_spec = pl.BlockSpec((TR, 1), lambda r, s: (r, 0))
    x_spec = pl.BlockSpec((TR, TS), lambda r, s: (r, s))

    out2 = pl.pallas_call(
        _dyt_kernel,
        out_shape=jax.ShapeDtypeStruct((R_pad, HW_pad), x_nchw.dtype),
        grid=(R_pad // TR, HW_pad // TS),
        in_specs=[param_spec, param_spec, param_spec, x_spec],
        out_specs=x_spec,
        compiler_params=pltpu.CompilerParams(
            dimension_semantics=("parallel", "parallel")),
    )(a_rows, g_rows, b_rows, x2)

    if (R_pad, HW_pad) != (R, HW):
        out2 = out2[:R, :HW]
    return out2.reshape(N, C, H, W)


if __name__ == "__main__":
    key = jax.random.PRNGKey(0)
    N, C, H, W = 2, 4, 16, 16

    x = jax.random.normal(key, (N, C, H, W), dtype=jnp.float32)

    # Parameters exactly as in DyTNorm.__init__ (init_alpha=0.5).
    alpha = jnp.ones((C,), jnp.float32) * 0.5
    gamma = jnp.ones((C,), jnp.float32)
    beta = jnp.zeros((C,), jnp.float32)

    y = dyt_norm(x, alpha, gamma, beta)
    y = jax.block_until_ready(y)

    # Reference check (plain JAX, same semantics as the PyTorch forward).
    a_b = alpha.reshape(1, C, 1, 1)
    g_b = gamma.reshape(1, C, 1, 1)
    b_b = beta.reshape(1, C, 1, 1)
    y_ref = g_b * jnp.tanh(a_b * x) + b_b

    assert y.shape == x.shape and y.dtype == x.dtype
    assert jnp.allclose(y, y_ref, atol=1e-6, rtol=1e-6)

    print("KERNEL_OK")
</pallas_src>

<mosaic_0001>
module attributes {stable_mosaic.version = 11 : i64} {
  func.func @_dyt_kernel(%arg0: i32, %arg1: i32, %arg2: memref<8x1xf32, #tpu.memory_space<vmem>>, %arg3: memref<8x1xf32, #tpu.memory_space<vmem>>, %arg4: memref<8x1xf32, #tpu.memory_space<vmem>>, %arg5: memref<8x256xf32, #tpu.memory_space<vmem>>, %arg6: memref<8x256xf32, #tpu.memory_space<vmem>>) attributes {dimension_semantics = [#tpu.dimension_semantics<parallel>, #tpu.dimension_semantics<parallel>], iteration_bounds = array<i64: 1, 1>, scalar_prefetch = 0 : i64, scratch_operands = 0 : i64, tpu.core_type = #tpu.core_type<tc>, window_params = [{transform_indices = @transform_0, window_bounds = array<i64: 8, 1>}, {transform_indices = @transform_1, window_bounds = array<i64: 8, 1>}, {transform_indices = @transform_2, window_bounds = array<i64: 8, 1>}, {transform_indices = @transform_3, window_bounds = array<i64: 8, 256>}, {transform_indices = @transform_4, window_bounds = array<i64: 8, 256>}]} {
    %c0 = arith.constant 0 : index
    %c0_0 = arith.constant 0 : index
    %0 = vector.load %arg2[%c0, %c0_0] : memref<8x1xf32, #tpu.memory_space<vmem>>, vector<8x1xf32>
    %c0_1 = arith.constant 0 : index
    %c0_2 = arith.constant 0 : index
    %1 = vector.load %arg3[%c0_1, %c0_2] : memref<8x1xf32, #tpu.memory_space<vmem>>, vector<8x1xf32>
    %c0_3 = arith.constant 0 : index
    %c0_4 = arith.constant 0 : index
    %2 = vector.load %arg4[%c0_3, %c0_4] : memref<8x1xf32, #tpu.memory_space<vmem>>, vector<8x1xf32>
    %c0_5 = arith.constant 0 : index
    %c0_6 = arith.constant 0 : index
    %3 = vector.load %arg5[%c0_5, %c0_6] : memref<8x256xf32, #tpu.memory_space<vmem>>, vector<8x256xf32>
    %4 = vector.broadcast %0 : vector<8x1xf32> to vector<8x256xf32>
    %5 = arith.mulf %4, %3 : vector<8x256xf32>
    %6 = math.tanh %5 : vector<8x256xf32>
    %7 = vector.broadcast %1 : vector<8x1xf32> to vector<8x256xf32>
    %8 = arith.mulf %7, %6 : vector<8x256xf32>
    %9 = vector.broadcast %2 : vector<8x1xf32> to vector<8x256xf32>
    %10 = arith.addf %8, %9 : vector<8x256xf32>
    %c0_7 = arith.constant 0 : index
    %c0_8 = arith.constant 0 : index
    %11 = vector.load %arg6[%c0_7, %c0_8] : memref<8x256xf32, #tpu.memory_space<vmem>>, vector<8x256xf32>
    tpu.vector_store %arg6[%c0_7, %c0_8], %10 {strides = array<i32>} : memref<8x256xf32, #tpu.memory_space<vmem>>, vector<8x256xf32>,
    return
  }
  func.func @transform_0(%arg0: i32, %arg1: i32) -> (i32, i32) {
    %c0_i32 = arith.constant 0 : i32
    %c0_i32_0 = arith.constant 0 : i32
    return %arg0, %c0_i32 : i32, i32
  }
  func.func @transform_1(%arg0: i32, %arg1: i32) -> (i32, i32) {
    %c0_i32 = arith.constant 0 : i32
    %c0_i32_0 = arith.constant 0 : i32
    return %arg0, %c0_i32 : i32, i32
  }
  func.func @transform_2(%arg0: i32, %arg1: i32) -> (i32, i32) {
    %c0_i32 = arith.constant 0 : i32
    %c0_i32_0 = arith.constant 0 : i32
    return %arg0, %c0_i32 : i32, i32
  }
  func.func @transform_3(%arg0: i32, %arg1: i32) -> (i32, i32) {
    %c0_i32 = arith.constant 0 : i32
    return %arg0, %arg1 : i32, i32
  }
  func.func @transform_4(%arg0: i32, %arg1: i32) -> (i32, i32) {
    %c0_i32 = arith.constant 0 : i32
    return %arg0, %arg1 : i32, i32
  }
}

</mosaic_0001>

<bundles_post_ra>
// kernel: tpu_custom_call.1
= control target key start
LH: loop header
LB: loop body
LE: loop exit
PB: predicated region body
PF: predicated region fallthrough
CT: control target
= control target key end

     0   :  { %v92_v2 = vmov 0   ;;  %s137_s0 = inlined_call_operand.vmem [shape: f32[8,1], index: 0, kind: input, shape index: {}]   ;;  %s138_s1 = inlined_call_operand.vmem [shape: f32[8,1], index: 1, kind: input, shape index: {}]   ;;  %s139_s2 = inlined_call_operand.vmem [shape: f32[8,1], index: 2, kind: input, shape index: {}]   ;;  %s140_s3 = inlined_call_operand.vmem [shape: f32[8,256], index: 3, kind: input, shape index: {}]   ;;  %s141_s4 = inlined_call_operand.hbm [shape: f32[8,256], index: 4, kind: output, shape index: {}]  }
   0x1   :  { %v18_v0 = vld [vmem:[%s137_s0] sm:$0xff]  ;;  %64 = vset.pattern.permute.xlu0 %v92_v2  ;;  %65 = vset.pattern.permute.xlu1 %v92_v2 }
   0x2   :  { %v20_v1 = vld [vmem:[%s139_s2] sm:$0xff] }
   0x3   :  { %9 = vsyncpa [#allocation3], 0  ;;  %25 = vperm.xlu0 %64, %v18_v0   ;;  %41 = vperm.xlu1 %65, %v20_v1   ;;  %v19_v3 = vld [vmem:[%s138_s1] sm:$0xff]  ;;  %v22_v5 = vld [vmem:[%s140_s3 + $0x8] sm:$0xff]  ;;  %s93_s1 = smov [#allocation2]  }
   0x4   :  { %v21_v4 = vld [vmem:[%s140_s3] sm:$0xff]  ;;  %s54_s2 = sshll.u32 %s93_s1, 4  ;;  %s55_s2 = int_to_ptr.vmem [resolvable:$true] %s54_s2 }
   0x5   :  { %s70_s24 = scalar_lea.vmem %s55_s2, 256  ;;  %p75_p1 = scmp.lt.s32.totalorder %s55_s2, %s55_s2 }
   0x6   :  { %p71_p0 = scmp.ne.s32.totalorder %s55_s2, %s70_s24  ;;  %p76_p2 = scmp.lt.s32.totalorder %s70_s24, %s70_s24 }
   0x7   :  { %34 = vperm.xlu0 %64, %v19_v3  }
   0x8   :  { %p77_p3 = por %p76_p2, %p75_p1 }
   0xa   :  { %p78_p4 = pnand %p77_p3, %p71_p0 }
  0x7e   :  { %v26_v6 = vpop.permute.xlu0 %25  ;;  %v42_v11 = vpop.permute.xlu1 %41 }
  0x7f   :  { %v28_v7 = vmul.f32 %v26_v6, %v21_v4  ;;  %v29_v8 = vmul.f32 %v26_v6, %v22_v5 }
  0x81   :  { %66 = vtanh.f32 %v28_v7 }
  0x82   :  { %68 = vtanh.f32 %v29_v8  ;;  %v35_v10 = vpop.permute.xlu0 %34 }
  0x8e   :  { %v67_v9 = vpop.eup %66 }
  0x8f   :  { %v69_v12 = vpop.eup %68  ;;  %v37_v13 = vmul.f32 %v67_v9, %v35_v10 }
  0x90   :  { %v38_v14 = vmul.f32 %v69_v12, %v35_v10 }
  0x91   :  { %v44_v15 = vadd.f32 %v42_v11, %v37_v13 }
  0x92   :  { %v45_v16 = vadd.f32 %v42_v11, %v38_v14 }
  0x93   :  { %46 = vst [vmem:[#allocation2] sm:$0xff] %v44_v15 }
  0x94   :  { %47 = vst [vmem:[#allocation2 + $0x8] sm:$0xff] %v45_v16 }
  0x95   :  { %81 = shalt.err (!%p78_p4)
}
  0x96   :  { %57 = dma.vmem_to_hbm [thread:$0]  %s55_s2, 256, %s141_s4, [#allocation3]  }
  0x97   :  { %90 = dma.done.wait [#allocation3], 256  }
  0x98   :  { %91 = vsyncadd [#allocation3], 4294967040 }
  0x99   :  { %61 = vsyncpa [#allocation3], 1 }

</bundles_post_ra>
